<compile_context>
chip_gen: v5e
topology: v5e:2x2
jax: 0.10.0
libtpu: 0.0.40
codegen_flags: <defaults>
</compile_context>

<pallas_src>
import jax
import jax.numpy as jnp
from jax import lax
from jax.experimental import pallas as pl
from jax.experimental.pallas import tpu as pltpu


def _round_up(x, m):
    return ((x + m - 1) // m) * m


def _node_tile(n_pad):
    for t in (256, 128, 64, 32, 16, 8):
        if n_pad % t == 0:
            return t
    return n_pad


def _vmem_limit(est_bytes):
    # Explicit scoped-VMEM limit: 2x estimated footprint, never below the
    # largest default (32 MiB), capped at 48 MiB so it is valid on v7x (64 MiB
    # physical per TC) as well as v5e/v6e.
    return int(min(max(2 * int(est_bytes), 32 * 1024 * 1024), 48 * 1024 * 1024))


# ----------------------------------------------------------------------------
# encode_node: Linear + ReLU, gridded over node tiles ("parallel").
# ----------------------------------------------------------------------------
def _encode_kernel(x_ref, w_ref, b_ref, o_ref):
    o_ref[...] = jnp.maximum(
        jnp.dot(x_ref[...], w_ref[...], preferred_element_type=jnp.float32)
        + b_ref[...],
        0.0,
    )


def _encode_node(x, w, b):
    n, f_in = x.shape
    c = w.shape[1]
    tn = _node_tile(n)
    est = 4 * (2 * tn * f_in + f_in * c + c + 2 * tn * c)
    return pl.pallas_call(
        _encode_kernel,
        out_shape=jax.ShapeDtypeStruct((n, c), jnp.float32),
        grid=(n // tn,),
        in_specs=[
            pl.BlockSpec((tn, f_in), lambda i: (i, 0)),
            pl.BlockSpec((f_in, c), lambda i: (0, 0)),
            pl.BlockSpec((1, c), lambda i: (0, 0)),
        ],
        out_specs=pl.BlockSpec((tn, c), lambda i: (i, 0)),
        compiler_params=pltpu.CompilerParams(
            dimension_semantics=("parallel",),
            vmem_limit_bytes=_vmem_limit(est),
        ),
    )(x, w, b)


# ----------------------------------------------------------------------------
# One GINEConv layer: grid over edge blocks, accumulate into VMEM scratch.
# ----------------------------------------------------------------------------
def _gine_conv_kernel(
    eps_ref,                                   # SMEM (1,1): eps
    x_ref, src_ref, dst_ref, ea_ref,           # nodes (N,C) resident, edge block
    we_ref, be_ref, wa_ref, ba_ref, wb_ref, bb_ref,
    out_ref,                                   # (N,C), written at last step
    agg_ref,                                   # (N,C) f32 scratch accumulator
):
    e = pl.program_id(0)
    n_blocks = pl.num_programs(0)
    n_nodes = x_ref.shape[0]
    te = ea_ref.shape[0]

    @pl.when(e == 0)
    def _():
        agg_ref[...] = jnp.zeros_like(agg_ref)

    # Per-layer edge linear: edge_attr -> node feature dim.
    ea = (
        jnp.dot(ea_ref[...], we_ref[...], preferred_element_type=jnp.float32)
        + be_ref[...]
    )                                                                 # [TE, C]

    # Single [TE, N] one-hot per role, bf16 (0/1 exact). Padded edges carry a
    # sentinel index >= N, so their rows are all-zero and contribute nothing.
    lane_ids = lax.broadcasted_iota(jnp.int32, (te, n_nodes), 1)
    onehot_src = jnp.where(lane_ids == src_ref[...], 1.0, 0.0).astype(jnp.bfloat16)
    onehot_dst = jnp.where(lane_ids == dst_ref[...], 1.0, 0.0).astype(jnp.bfloat16)

    # Gather x_j = x[src] as a bf16 MXU matmul with f32 accumulation.
    x_j = jnp.dot(
        onehot_src, x_ref[...].astype(jnp.bfloat16),
        preferred_element_type=jnp.float32,
    )                                                                 # [TE, C]
    msg = jnp.maximum(x_j + ea, 0.0)                                  # [TE, C]

    # Scatter-add over destinations: contract the edge axis of the SAME
    # [TE, N] one-hot (transposed-LHS matmul; no (N, E) matrix materialized).
    agg_ref[...] += lax.dot_general(
        onehot_dst, msg.astype(jnp.bfloat16),
        dimension_numbers=(((0,), (0,)), ((), ())),
        preferred_element_type=jnp.float32,
    )                                                                 # [N, C]

    @pl.when(e == n_blocks - 1)
    def _():
        h = agg_ref[...] + (1.0 + eps_ref[0, 0]) * x_ref[...]
        h = jnp.maximum(
            jnp.dot(h, wa_ref[...], preferred_element_type=jnp.float32) + ba_ref[...],
            0.0,
        )
        h = jnp.maximum(
            jnp.dot(h, wb_ref[...], preferred_element_type=jnp.float32) + bb_ref[...],
            0.0,
        )
        out_ref[...] = h


def _gine_conv(x, src, dst, edge_attr, eps, we, be, wa, ba, wb, bb, *, edge_tile):
    n, c = x.shape
    e_pad, e_dim = edge_attr.shape
    n_blocks = e_pad // edge_tile

    est = (
        4 * (4 * n * c + e_dim * c + 2 * c * c + 3 * c)      # x/out/agg + weights
        + 8 * edge_tile * (e_dim + 2)                        # double-buffered edge blocks
        + 2 * 2 * edge_tile * n                              # two bf16 one-hots
        + 3 * 4 * edge_tile * c                              # ea / x_j / msg
    )

    return pl.pallas_call(
        _gine_conv_kernel,
        out_shape=jax.ShapeDtypeStruct((n, c), jnp.float32),
        grid=(n_blocks,),
        in_specs=[
            pl.BlockSpec(memory_space=pltpu.MemorySpace.SMEM),        # eps
            pl.BlockSpec((n, c), lambda e: (0, 0)),                   # x (resident)
            pl.BlockSpec((edge_tile, 1), lambda e: (e, 0)),           # src block
            pl.BlockSpec((edge_tile, 1), lambda e: (e, 0)),           # dst block
            pl.BlockSpec((edge_tile, e_dim), lambda e: (e, 0)),       # edge_attr block
            pl.BlockSpec((e_dim, c), lambda e: (0, 0)),               # We
            pl.BlockSpec((1, c), lambda e: (0, 0)),                   # be
            pl.BlockSpec((c, c), lambda e: (0, 0)),                   # Wa
            pl.BlockSpec((1, c), lambda e: (0, 0)),                   # ba
            pl.BlockSpec((c, c), lambda e: (0, 0)),                   # Wb
            pl.BlockSpec((1, c), lambda e: (0, 0)),                   # bb
        ],
        out_specs=pl.BlockSpec((n, c), lambda e: (0, 0)),
        scratch_shapes=[pltpu.VMEM((n, c), jnp.float32)],
        compiler_params=pltpu.CompilerParams(
            dimension_semantics=("arbitrary",),
            vmem_limit_bytes=_vmem_limit(est),
        ),
    )(eps, x, src, dst, edge_attr, we, be, wa, ba, wb, bb)


# ----------------------------------------------------------------------------
# Full GINEEncoder forward.
# ----------------------------------------------------------------------------
def gine_encoder(x, edge_index, edge_attr, params, *, edge_tile=256):
    n = x.shape[0]
    e = edge_attr.shape[0]

    n_pad = _round_up(n, 8)
    edge_tile = min(edge_tile, _round_up(e, 8))
    e_pad = _round_up(e, edge_tile)

    x_p = jnp.pad(x.astype(jnp.float32), ((0, n_pad - n), (0, 0)))
    # Padded edges point at sentinel node index n_pad -> match no one-hot column.
    src = jnp.pad(edge_index[0].astype(jnp.int32), (0, e_pad - e),
                  constant_values=n_pad).reshape(e_pad, 1)
    dst = jnp.pad(edge_index[1].astype(jnp.int32), (0, e_pad - e),
                  constant_values=n_pad).reshape(e_pad, 1)
    ea = jnp.pad(edge_attr.astype(jnp.float32), ((0, e_pad - e), (0, 0)))

    x0 = _encode_node(x_p, params["w_enc"], params["b_enc"])

    eps1 = jnp.array([[params["eps1"]]], dtype=jnp.float32)
    eps2 = jnp.array([[params["eps2"]]], dtype=jnp.float32)

    h1 = _gine_conv(x0, src, dst, ea, eps1,
                    params["we1"], params["be1"],
                    params["w1a"], params["b1a"], params["w1b"], params["b1b"],
                    edge_tile=edge_tile)
    # TODO(synk): nn.Dropout(0.2) between the conv layers is eval-mode identity
    # here; F.relu is already applied by conv1's trailing ReLU (removed as
    # redundant per perf review).
    h2 = _gine_conv(h1, src, dst, ea, eps2,
                    params["we2"], params["be2"],
                    params["w2a"], params["b2a"], params["w2b"], params["b2b"],
                    edge_tile=edge_tile)
    # TODO(synk): the CNN target branch, scatter_mean pooling and fusion MLP of
    # the top-level GineConv module are out of scope for this kernel.
    return h2[:n]


# ----------------------------------------------------------------------------
# Pure-JAX reference + deterministic init.
# ----------------------------------------------------------------------------
def gine_encoder_ref(x, edge_index, edge_attr, params):
    def lin_relu(h, w, b):
        return jnp.maximum(h @ w + b, 0.0)

    x0 = lin_relu(x, params["w_enc"], params["b_enc"])
    src, dst = edge_index[0], edge_index[1]

    def conv(xin, we, be, wa, ba, wb, bb, eps):
        ea = edge_attr @ we + be
        msg = jnp.maximum(xin[src] + ea, 0.0)
        agg = jnp.zeros_like(xin).at[dst].add(msg)
        h = agg + (1.0 + eps) * xin
        return lin_relu(lin_relu(h, wa, ba), wb, bb)

    h1 = conv(x0, params["we1"], params["be1"], params["w1a"], params["b1a"],
              params["w1b"], params["b1b"], params["eps1"])
    h2 = conv(h1, params["we2"], params["be2"], params["w2a"], params["b2a"],
              params["w2b"], params["b2b"], params["eps2"])
    return h2


def init_params(key, in_channels, out_channels, e_dim):
    ks = jax.random.split(key, 7)

    def lin(k, fan_in, fan_out):
        kw, kb = jax.random.split(k)
        bound = 1.0 / float(fan_in) ** 0.5
        w = jax.random.uniform(kw, (fan_in, fan_out), jnp.float32, -bound, bound)
        b = jax.random.uniform(kb, (1, fan_out), jnp.float32, -bound, bound)
        return w, b

    w_enc, b_enc = lin(ks[0], in_channels, out_channels)
    we1, be1 = lin(ks[1], e_dim, out_channels)
    w1a, b1a = lin(ks[2], out_channels, out_channels)
    w1b, b1b = lin(ks[3], out_channels, out_channels)
    we2, be2 = lin(ks[4], e_dim, out_channels)
    w2a, b2a = lin(ks[5], out_channels, out_channels)
    w2b, b2b = lin(ks[6], out_channels, out_channels)

    return dict(
        w_enc=w_enc, b_enc=b_enc,
        we1=we1, be1=be1, w1a=w1a, b1a=b1a, w1b=w1b, b1b=b1b,
        we2=we2, be2=be2, w2a=w2a, b2a=b2a, w2b=w2b, b2b=b2b,
        eps1=0.0, eps2=0.0,   # train_eps=True -> Parameter initialized to 0
    )


if __name__ == "__main__":
    key = jax.random.PRNGKey(0)
    # Small graph, channel sizes as in the module: GINEEncoder(33, 256, 7).
    N, E = 16, 48
    in_channels, out_channels, e_dim = 33, 256, 7

    k = jax.random.split(key, 5)
    x = jax.random.normal(k[0], (N, in_channels), jnp.float32)
    src = jax.random.randint(k[1], (E,), 0, N, dtype=jnp.int32)
    dst = jax.random.randint(k[2], (E,), 0, N, dtype=jnp.int32)
    edge_index = jnp.stack([src, dst], axis=0)                 # [2, E]
    edge_attr = jax.random.normal(k[3], (E, e_dim), jnp.float32)

    params = init_params(k[4], in_channels, out_channels, e_dim)

    out = gine_encoder(x, edge_index, edge_attr, params)
    jax.block_until_ready(out)
    assert out.shape == (N, out_channels)

    ref = gine_encoder_ref(x, edge_index, edge_attr, params)
    assert bool(jnp.all(jnp.isfinite(out)))
    # bf16 is only used on the gather/scatter path -> loose-but-safe tolerance.
    assert bool(jnp.allclose(out, ref, rtol=5e-2, atol=5e-2))
    print("KERNEL_OK")
</pallas_src>

<mosaic_0001>
module attributes {stable_mosaic.version = 11 : i64} {
  func.func @_encode_kernel(%arg0: i32, %arg1: memref<16x33xf32, #tpu.memory_space<vmem>>, %arg2: memref<33x256xf32, #tpu.memory_space<vmem>>, %arg3: memref<1x256xf32, #tpu.memory_space<vmem>>, %arg4: memref<16x256xf32, #tpu.memory_space<vmem>>) attributes {dimension_semantics = [#tpu.dimension_semantics<parallel>], iteration_bounds = array<i64: 1>, scalar_prefetch = 0 : i64, scratch_operands = 0 : i64, tpu.core_type = #tpu.core_type<tc>, window_params = [{transform_indices = @transform_0, window_bounds = array<i64: 16, 33>}, {pipeline_mode = #tpu.pipeline_mode<synchronous>, transform_indices = @transform_1, window_bounds = array<i64: 33, 256>}, {pipeline_mode = #tpu.pipeline_mode<synchronous>, transform_indices = @transform_2, window_bounds = array<i64: 1, 256>}, {transform_indices = @transform_3, window_bounds = array<i64: 16, 256>}]} {
    %c0 = arith.constant 0 : index
    %c0_0 = arith.constant 0 : index
    %0 = vector.load %arg1[%c0, %c0_0] : memref<16x33xf32, #tpu.memory_space<vmem>>, vector<16x33xf32>
    %c0_1 = arith.constant 0 : index
    %c0_2 = arith.constant 0 : index
    %1 = vector.load %arg2[%c0_1, %c0_2] : memref<33x256xf32, #tpu.memory_space<vmem>>, vector<33x256xf32>
    %cst = arith.constant dense<0.000000e+00> : vector<16x256xf32>
    %2 = tpu.matmul %0, %1, %cst {dimension_numbers = #tpu.dot_dimension_numbers<[1], [0], [0], [1], [0, 0, 1, 1], [], []>} : vector<16x33xf32>, vector<33x256xf32>, vector<16x256xf32> -> vector<16x256xf32>
    %c0_3 = arith.constant 0 : index
    %c0_4 = arith.constant 0 : index
    %3 = vector.load %arg3[%c0_3, %c0_4] : memref<1x256xf32, #tpu.memory_space<vmem>>, vector<1x256xf32>
    %4 = vector.broadcast %3 : vector<1x256xf32> to vector<16x256xf32>
    %5 = arith.addf %2, %4 : vector<16x256xf32>
    %cst_5 = arith.constant 0.000000e+00 : f32
    %6 = vector.broadcast %cst_5 : f32 to vector<16x256xf32>
    %7 = arith.maximumf %5, %6 : vector<16x256xf32>
    %c0_6 = arith.constant 0 : index
    %c0_7 = arith.constant 0 : index
    %8 = vector.load %arg4[%c0_6, %c0_7] : memref<16x256xf32, #tpu.memory_space<vmem>>, vector<16x256xf32>
    tpu.vector_store %arg4[%c0_6, %c0_7], %7 {strides = array<i32>} : memref<16x256xf32, #tpu.memory_space<vmem>>, vector<16x256xf32>,
    return
  }
  func.func @transform_0(%arg0: i32) -> (i32, i32) {
    %c0_i32 = arith.constant 0 : i32
    %c0_i32_0 = arith.constant 0 : i32
    return %arg0, %c0_i32 : i32, i32
  }
  func.func @transform_1(%arg0: i32) -> (i32, i32) {
    %c0_i32 = arith.constant 0 : i32
    %c0_i32_0 = arith.constant 0 : i32
    %c0_i32_1 = arith.constant 0 : i32
    return %c0_i32, %c0_i32_0 : i32, i32
  }
  func.func @transform_2(%arg0: i32) -> (i32, i32) {
    %c0_i32 = arith.constant 0 : i32
    %c0_i32_0 = arith.constant 0 : i32
    %c0_i32_1 = arith.constant 0 : i32
    return %c0_i32, %c0_i32_0 : i32, i32
  }
  func.func @transform_3(%arg0: i32) -> (i32, i32) {
    %c0_i32 = arith.constant 0 : i32
    %c0_i32_0 = arith.constant 0 : i32
    return %arg0, %c0_i32 : i32, i32
  }
}

</mosaic_0001>

<bundles_post_ra>
// kernel: tpu_custom_call.1
= control target key start
LH: loop header
LB: loop body
LE: loop exit
PB: predicated region body
PF: predicated region fallthrough
CT: control target
= control target key end

     0   :  { %8 = vsyncpa [#allocation3], 0  ;;  %s338_s0 = inlined_call_operand.hbm [shape: f32[16,33], index: 0, kind: input, shape index: {}]   ;;  %s339_s1 = inlined_call_operand.hbm [shape: f32[33,256], index: 1, kind: input, shape index: {}]   ;;  %s340_s2 = inlined_call_operand.hbm [shape: f32[1,256], index: 2, kind: input, shape index: {}]   ;;  %s341_s3 = inlined_call_operand.hbm [shape: f32[16,256], index: 3, kind: output, shape index: {}]  }
   0x1   :  { %9 = vsyncpa [#allocation6], 0  ;;  %s28_s14 = sshll.u32 %s339_s1, 4  ;;  %s29_s14 = int_to_ptr.hbm [resolvable:$true] %s28_s14 }
   0x2   :  { %10 = vsyncpa [#allocation4], 0  ;;  %s292_s15 = smov [#allocation5]   ;;  %s15_s19 = sshll.u32 %s338_s0, 4  ;;  %s16_s19 = int_to_ptr.hbm [resolvable:$true] %s15_s19 }
   0x3   :  { %s30_s16 = sshll.u32 %s292_s15, 4  ;;  %s293_s20 = smov 256   ;;  %s31_s16 = int_to_ptr.vmem [resolvable:$true] %s30_s16 }
   0x4   :  { %s294_s21 = smov 16   ;;  %s295_s22 = smov [#allocation2]  }
   0x5   :  { %36 = dma.hbm_to_vmem [thread:$0]  %s29_s14, 1280, %s31_s16, [#allocation6], %s293_s20, %s293_s20, %s294_s21  }
   0x6   :  { %s17_s23 = sshll.u32 %s295_s22, 4  ;;  %s296_s1 = smov 128   ;;  %s18_s23 = int_to_ptr.vmem [resolvable:$true] %s17_s23 }
   0x7   :  { %s297_s24 = smov 8   ;;  %s42_s27 = sshll.u32 %s340_s2, 4  ;;  %s43_s27 = int_to_ptr.hbm [resolvable:$true] %s42_s27 }
   0x8   :  { %23 = dma.hbm_to_vmem [thread:$0]  %s16_s19, 256, %s18_s23, [#allocation3], %s296_s1, %s296_s1, %s297_s24  }
   0x9   :  { %s298_s28 = smov [#allocation7]  }
   0xa   :  { %s44_s0 = sshll.u32 %s298_s28, 4  ;;  %s45_s0 = int_to_ptr.vmem [resolvable:$true] %s44_s0 }
   0xb   :  { %47 = dma.hbm_to_vmem [thread:$0]  %s43_s27, 32, %s45_s0, [#allocation6]  }
   0xc   :  { %286 = dma.done.wait [#allocation3], 256  }
   0xd   :  { %287 = vsyncadd [#allocation3], 4294967040 }
   0xe   :  { %288 = dma.done.wait [#allocation6], 1312  }
   0xf   :  { %289 = vsyncadd [#allocation6], 4294965984  ;;  %vm85_vm0 = vcmask 1040384   ;;  %v70_v0 = vld [vmem:[#allocation5 + $0x40] sm:$0x1]  ;;  %v68_v2 = vld [vmem:[#allocation5 + $0x30] sm:$0xff] }
  0x10   :  { %v71_v1 = vld [vmem:[#allocation5 + $0x48] sm:$0x1]  ;;  %172 = vmatpush.msk.msra.mxu2 %vm85_vm0, %v70_v0  ;;  %v69_v3 = vld [vmem:[#allocation5 + $0x38] sm:$0xff]  ;;  %v66_v4 = vld [vmem:[#allocation5 + $0x20] sm:$0xff]  ;;  %166 = vmatpush.msk.msra.mxu0 %vm85_vm0, %v70_v0  ;;  %vm78_vm1 = vcmask 269312   ;;  %s299_s2 = smov [#allocation8]  }
  0x11   :  { %177 = vmatpush.msk.msra.mxu3 %vm85_vm0, %v71_v1  ;;  %v67_v5 = vld [vmem:[#allocation5 + $0x28] sm:$0xff]  ;;  %169 = vmatpush.msk.msra.mxu1 %vm85_vm0, %v71_v1  ;;  %v64_v6 = vld [vmem:[#allocation5 + $0x10] sm:$0xff]  ;;  %v65_v7 = vld [vmem:[#allocation5 + $0x18] sm:$0xff]  ;;  %s150_s29 = sshll.u32 %s299_s2, 4  ;;  %s152_s5 = sshll.u32 %s341_s3, 4  ;;  %s151_s29 = int_to_ptr.vmem [resolvable:$true] %s150_s29  ;;  %s153_s5 = int_to_ptr.hbm [resolvable:$true] %s152_s5 }
  0x12   :  { %173 = vmatpush.msra.mxu2 %v68_v2  ;;  %104 = vmatpush.msra.mxu0 %v68_v2  ;;  %v62_v8 = vld [vmem:[#allocation5] sm:$0xff]  ;;  %v63_v9 = vld [vmem:[#allocation5 + $0x8] sm:$0xff]  ;;  %v61_v10 = vld [vmem:[#allocation2 + $0x8] sm:$0xff] }
  0x13   :  { %178 = vmatpush.msra.mxu3 %v69_v3  ;;  %127 = vmatpush.msra.mxu1 %v69_v3  ;;  %v60_v11 = vld [vmem:[#allocation2] sm:$0xff] }
  0x14   :  { %174 = vmatpush.msra.mxu2 %v66_v4  ;;  %105 = vmatpush.msra.mxu0 %v66_v4  ;;  %v72_v12 = vld [vmem:[#allocation7] sm:$0x3] }
  0x15   :  { %179 = vmatpush.msra.mxu3 %v67_v5  ;;  %128 = vmatpush.msra.mxu1 %v67_v5  ;;  %v74_v13 = vperm.slane %v72_v12, 0  ;;  %v75_v14 = vperm.slane %v72_v12, 1 }
  0x16   :  { %175 = vmatpush.msra.mxu2 %v64_v6  ;;  %106 = vmatpush.msra.mxu0 %v64_v6 }
  0x17   :  { %180 = vmatpush.msra.mxu3 %v65_v7  ;;  %129 = vmatpush.msra.mxu1 %v65_v7 }
  0x18   :  { %176 = vmatpush.msra.mxu2 %v62_v8  ;;  %107 = vmatpush.msra.mxu0 %v62_v8 }
  0x19   :  { %181 = vmatpush.msra.mxu3 %v63_v9  ;;  %168 = vmatmul.msk.f32.vlgmr.msra.gmra.mxu2 %vm78_vm1, %v61_v10 }
  0x1a   :  { %171 = vmatmul.msk.f32.vlgmr.msra.gmra.mxu3 %vm78_vm1, %v61_v10  ;;  %130 = vmatpush.msra.mxu1 %v63_v9 }
  0x1b   :  { %167 = vmatmul.msk.f32.vlgmr.msra.gmra.mxu0 %vm78_vm1, %v60_v11  ;;  %170 = vmatmul.msk.f32.vlgmr.msra.gmra.mxu1 %vm78_vm1, %v60_v11 }
  0x98   :  { %v109_v15 = vpop.f32.mrf.mxu0  ;;  %v132_v16 = vpop.f32.mrf.mxu1 }
  0x99   :  { %v110_v17 = vadd.f32 %v109_v15, %v74_v13  ;;  %v133_v18 = vadd.f32 %v132_v16, %v75_v14 }
  0x9b   :  { %v138_v19 = vmax.f32 %v110_v17, 0.0  ;;  %v139_v20 = vmax.f32 %v133_v18, 0.0 }
  0x9c   :  { %v112_v21 = vpop.f32.mrf.mxu2 }
  0x9d   :  { %v135_v22 = vpop.f32.mrf.mxu3  ;;  %142 = vst [vmem:[#allocation8] sm:$0xff] %v138_v19  ;;  %v113_v23 = vadd.f32 %v112_v21, %v74_v13 }
  0x9e   :  { %v136_v24 = vadd.f32 %v135_v22, %v75_v14  ;;  %143 = vst [vmem:[#allocation8 + $0x8] sm:$0xff] %v139_v20 }
  0x9f   :  { %v140_v25 = vmax.f32 %v113_v23, 0.0 }
  0xa0   :  { %v141_v26 = vmax.f32 %v136_v24, 0.0 }
  0xa1   :  { %144 = vst [vmem:[#allocation8 + $0x10] sm:$0xff] %v140_v25 }
  0xa2   :  { %145 = vst [vmem:[#allocation8 + $0x18] sm:$0xff] %v141_v26 }
  0xa3   :  { %158 = dma.vmem_to_hbm [thread:$0]  %s151_s29, 512, %s153_s5, [#allocation4], %s293_s20, %s293_s20, %s294_s21  }
  0xa4   :  { %290 = dma.done.wait [#allocation4], 512  }
  0xa5   :  { %291 = vsyncadd [#allocation4], 4294966784 }
  0xa6   :  { %163 = vsyncpa [#allocation3], 1 }
  0xa7   :  { %164 = vsyncpa [#allocation6], 1 }
  0xa8   :  { %165 = vsyncpa [#allocation4], 1 }

</bundles_post_ra>
